<compile_context>
chip_gen: v7x
topology: tpu7x:2x2x1
jax: 0.10.0
libtpu: 0.0.40
codegen_flags: <defaults>
</compile_context>

<pallas_src>
from functools import partial

import jax
import jax.numpy as jnp
from jax.experimental import pallas as pl
from jax.experimental.pallas import tpu as pltpu

_MIB = 1024 * 1024


def label_smoothing_kernel(x_ref, tgt_ref, out_ref, acc_ref, *,
                           size, padding_idx, smoothing, confidence,
                           n_total, tile_n, tiles_per_split):
    c = pl.program_id(0)                       # megacore split ("parallel")
    i = pl.program_id(1)                       # row-tile within split ("arbitrary")
    t = c * tiles_per_split + i                # logical row-tile index

    x = x_ref[...].astype(jnp.float32)         # (TILE_N, V) logits (f32 or bf16 input)
    tgt = tgt_ref[...]                         # (TILE_N, 1) int32 targets
    tn, v = x.shape

    eps = smoothing / (size - 2)

    # --- log-softmax pieces; reuse (x - m) for both the exp-sum and sum_x ---
    m = jnp.max(x, axis=1, keepdims=True)                                   # (TILE_N, 1)
    xs = x - m
    lse = jnp.log(jnp.sum(jnp.exp(xs), axis=1, keepdims=True)) + m          # (TILE_N, 1)
    sum_x = jnp.sum(xs, axis=1, keepdims=True) + v * m                      # = sum_c x

    # --- target / padding columns (one masked pass + one static lane slice) ---
    col = jax.lax.broadcasted_iota(jnp.int32, (1, v), 1)                    # (1, V), broadcasts vs tgt
    x_tgt = jnp.sum(jnp.where(col == tgt, x, 0.0), axis=1, keepdims=True)   # x[n, tgt[n]]
    x_pad = x[:, padding_idx:padding_idx + 1]                               # static lane slice

    # For kept rows sum_c true_dist = eps*(V-2) + confidence = 1, so
    #   loss = lse - sum_c td_c * x_c = lse - (eps*sum_x + (conf-eps)*x_tgt - eps*x_pad)
    loss_rows = lse - (eps * sum_x + (confidence - eps) * x_tgt - eps * x_pad)

    # Zero rows whose target is padding_idx, rows past the true batch size
    # (garbage rows of the partial last tile) and fully out-of-range duplicated
    # tiles (clamped index_map when n_tiles is not a multiple of n_splits).
    row = t * tile_n + jax.lax.broadcasted_iota(jnp.int32, (tn, 1), 0)
    keep = jnp.logical_and(tgt != padding_idx, row < n_total)
    loss_rows = jnp.where(keep, loss_rows, 0.0)

    @pl.when(i == 0)
    def _():
        acc_ref[...] = jnp.zeros_like(acc_ref)

    acc_ref[...] += jnp.sum(loss_rows, axis=0, keepdims=True)               # (1, 1)

    @pl.when(i == pl.num_programs(1) - 1)
    def _():
        # Single lane-dense writeback of this split's partial sum.
        # (CrossEntropyLoss 'mean' divide-by-N happens in the wrapper so the
        #  per-core partials combine correctly.)
        out_ref[...] = jnp.broadcast_to(acc_ref[...], out_ref.shape)


def _vmem_limit_bytes():
    """Generation-aware scoped-VMEM request: 64 MiB on 128-MiB chips (v5e/v6e),
    ~41 MiB on v7x (64 MiB physical). Conservative fallback if no TPU info."""
    try:
        cap = pltpu.get_tpu_info().vmem_capacity_bytes
    except Exception:
        cap = 64 * _MIB
    return int(min(64 * _MIB, cap * 0.65))


def _choose_tile_n(n, v, itemsize, vmem_limit, target_tile_bytes=8 * _MIB):
    """Rows per tile: as large as fits a 0.72*vmem_limit budget (2 pipeline buffers
    + ~3 f32 row-temps per row), capped by ~8 MiB of input per tile, rounded to the
    dtype's sublane packing."""
    sub = {4: 8, 2: 16, 1: 32}.get(itemsize, 8)
    budget = int(0.72 * vmem_limit)
    per_row = v * (2 * itemsize + 3 * 4) + 8          # input double-buffer + f32 temps + tgt
    rows = max(sub, budget // max(per_row, 1))
    rows = min(rows, max(sub, target_tile_bytes // max(v * itemsize, 1)))
    rows = max(sub, (rows // sub) * sub)
    n_pad = ((n + sub - 1) // sub) * sub
    return min(rows, n_pad)


def label_smoothing_loss(x, target, *, size, padding_idx, smoothing, tile_n=None):
    n, v = x.shape
    assert v == size
    assert size > 2, "smoothing/(size-2) requires size > 2 (same as the PyTorch module)"
    confidence = 1.0 - smoothing
    tgt2d = target.astype(jnp.int32).reshape(n, 1)

    itemsize = jnp.dtype(x.dtype).itemsize
    sub = {4: 8, 2: 16, 1: 32}.get(itemsize, 8)
    vmem_limit = _vmem_limit_bytes()
    if tile_n is None:
        tile_n = _choose_tile_n(n, v, itemsize, vmem_limit)
    else:
        tile_n = max(sub, (int(tile_n) // sub) * sub)  # sublane-packed tile

    n_tiles = pl.cdiv(n, tile_n)
    # Leading "parallel" axis splits row tiles across TensorCores (v7x: 2 TCs).
    n_splits = 2 if n_tiles >= 2 else 1
    tiles_per_split = pl.cdiv(n_tiles, n_splits)

    def in_map(c, i, tpc=tiles_per_split, nt=n_tiles):
        # Clamp so the (possibly duplicated) trailing tile of the last split never
        # DMAs out of bounds; the kernel row-mask zeroes its contribution.
        return (jnp.minimum(c * tpc + i, nt - 1), 0)

    kernel = partial(label_smoothing_kernel, size=size, padding_idx=padding_idx,
                     smoothing=smoothing, confidence=confidence,
                     n_total=n, tile_n=tile_n, tiles_per_split=tiles_per_split)

    cost = pl.CostEstimate(
        flops=int(8 * n * v),
        transcendentals=int(n * v),
        bytes_accessed=int(n * v * itemsize + n * 4 + n_splits * 8 * 128 * 4),
    )

    out = pl.pallas_call(
        kernel,
        out_shape=jax.ShapeDtypeStruct((n_splits, 8, 128), jnp.float32),
        grid=(n_splits, tiles_per_split),
        in_specs=[pl.BlockSpec((tile_n, v), in_map),
                  pl.BlockSpec((tile_n, 1), in_map)],
        out_specs=pl.BlockSpec((1, 8, 128), lambda c, i: (c, 0, 0)),
        scratch_shapes=[pltpu.VMEM((1, 1), jnp.float32)],
        compiler_params=pltpu.CompilerParams(
            dimension_semantics=("parallel", "arbitrary"),
            vmem_limit_bytes=vmem_limit),
        cost_estimate=cost,
    )(x, tgt2d)

    # CrossEntropyLoss 'mean': divide the combined per-split sums by the global N.
    return jnp.sum(out[:, 0, 0]) / n


def reference_loss(x, target, *, size, padding_idx, smoothing):
    """Pure-JAX reference mirroring the PyTorch module."""
    confidence = 1.0 - smoothing
    n, v = x.shape
    logp = jax.nn.log_softmax(x.astype(jnp.float32), axis=1)
    td = jnp.full((n, v), smoothing / (size - 2), dtype=jnp.float32)
    td = td.at[jnp.arange(n), target].set(confidence)
    td = td.at[:, padding_idx].set(0.0)
    td = jnp.where((target == padding_idx)[:, None], 0.0, td)
    return jnp.mean(-jnp.sum(td * logp, axis=1))


if __name__ == "__main__":
    SIZE = 32          # vocab / class count
    PADDING_IDX = 0
    SMOOTHING = 0.1

    key = jax.random.PRNGKey(0)
    k1, k2, k3, k4 = jax.random.split(key, 4)

    # --- case 1: small batch, single tile, f32 ---
    N = 8
    x = jax.random.normal(k1, (N, SIZE), dtype=jnp.float32)
    target = jax.random.randint(k2, (N,), 0, SIZE, dtype=jnp.int32)
    target = target.at[3].set(PADDING_IDX)   # exercise the padded-row mask path

    loss = label_smoothing_loss(x, target, size=SIZE,
                                padding_idx=PADDING_IDX, smoothing=SMOOTHING)
    loss = jax.block_until_ready(loss)
    ref = reference_loss(x, target, size=SIZE,
                         padding_idx=PADDING_IDX, smoothing=SMOOTHING)
    assert jnp.allclose(loss, ref, atol=1e-5, rtol=1e-5), (loss, ref)

    # --- case 2: multi-tile grid with partial last tile + 2-way parallel split ---
    N2 = 50
    x2 = jax.random.normal(k3, (N2, SIZE), dtype=jnp.float32)
    target2 = jax.random.randint(k4, (N2,), 0, SIZE, dtype=jnp.int32)
    target2 = target2.at[7].set(PADDING_IDX)

    loss2 = label_smoothing_loss(x2, target2, size=SIZE, padding_idx=PADDING_IDX,
                                 smoothing=SMOOTHING, tile_n=16)   # 4 tiles -> 2 splits x 2
    loss2 = jax.block_until_ready(loss2)
    ref2 = reference_loss(x2, target2, size=SIZE,
                          padding_idx=PADDING_IDX, smoothing=SMOOTHING)
    assert jnp.allclose(loss2, ref2, atol=1e-5, rtol=1e-5), (loss2, ref2)

    # --- case 3: bf16 logits (per-tile cast; halves HBM bytes in real models) ---
    x2_bf16 = x2.astype(jnp.bfloat16)
    loss3 = label_smoothing_loss(x2_bf16, target2, size=SIZE, padding_idx=PADDING_IDX,
                                 smoothing=SMOOTHING, tile_n=16)
    loss3 = jax.block_until_ready(loss3)
    ref3 = reference_loss(x2_bf16.astype(jnp.float32), target2, size=SIZE,
                          padding_idx=PADDING_IDX, smoothing=SMOOTHING)
    assert jnp.allclose(loss3, ref3, atol=1e-2, rtol=1e-2), (loss3, ref3)

    # --- case 4: auto tile_n path (byte-capped tiling) ---
    loss4 = label_smoothing_loss(x2, target2, size=SIZE, padding_idx=PADDING_IDX,
                                 smoothing=SMOOTHING)
    loss4 = jax.block_until_ready(loss4)
    assert jnp.allclose(loss4, ref2, atol=1e-5, rtol=1e-5), (loss4, ref2)

    print("KERNEL_OK")
</pallas_src>

<mosaic_0001>
module attributes {stable_mosaic.version = 11 : i64} {
  func.func @label_smoothing_kernel(%arg0: i32, %arg1: i32, %arg2: memref<8x32xf32, #tpu.memory_space<vmem>>, %arg3: memref<8x1xi32, #tpu.memory_space<vmem>>, %arg4: memref<1x8x128xf32, #tpu.memory_space<vmem>>, %arg5: memref<1x1xf32, #tpu.memory_space<vmem>>) attributes {dimension_semantics = [#tpu.dimension_semantics<parallel>, #tpu.dimension_semantics<arbitrary>], iteration_bounds = array<i64: 1, 1>, scalar_prefetch = 0 : i64, scratch_operands = 1 : i64, tpu.core_type = #tpu.core_type<tc>, window_params = [{transform_indices = @transform_0, window_bounds = array<i64: 8, 32>}, {transform_indices = @transform_1, window_bounds = array<i64: 8, 1>}, {transform_indices = @transform_2, window_bounds = array<i64: 1, 8, 128>}]} {
    %c1_i32 = arith.constant 1 : i32
    %0 = arith.muli %arg0, %c1_i32 : i32
    %1 = arith.addi %0, %arg1 : i32
    %c0 = arith.constant 0 : index
    %c0_0 = arith.constant 0 : index
    %2 = vector.load %arg2[%c0, %c0_0] : memref<8x32xf32, #tpu.memory_space<vmem>>, vector<8x32xf32>
    %c0_1 = arith.constant 0 : index
    %c0_2 = arith.constant 0 : index
    %3 = vector.load %arg3[%c0_1, %c0_2] : memref<8x1xi32, #tpu.memory_space<vmem>>, vector<8x1xi32>
    %cst = arith.constant dense<0xFF800000> : vector<8xf32>
    %4 = vector.multi_reduction <maximumf>, %2, %cst [1] : vector<8x32xf32> to vector<8xf32>
    %5 = vector.shape_cast %4 : vector<8xf32> to vector<8x1xf32>
    %6 = vector.broadcast %5 : vector<8x1xf32> to vector<8x32xf32>
    %7 = arith.subf %2, %6 : vector<8x32xf32>
    %8 = math.exp %7 : vector<8x32xf32>
    %cst_3 = arith.constant dense<0.000000e+00> : vector<8xf32>
    %9 = vector.multi_reduction <add>, %8, %cst_3 [1] : vector<8x32xf32> to vector<8xf32>
    %10 = vector.shape_cast %9 : vector<8xf32> to vector<8x1xf32>
    %11 = math.log %10 : vector<8x1xf32>
    %12 = arith.addf %11, %5 : vector<8x1xf32>
    %cst_4 = arith.constant dense<0.000000e+00> : vector<8xf32>
    %13 = vector.multi_reduction <add>, %7, %cst_4 [1] : vector<8x32xf32> to vector<8xf32>
    %14 = vector.shape_cast %13 : vector<8xf32> to vector<8x1xf32>
    %cst_5 = arith.constant 3.200000e+01 : f32
    %15 = vector.broadcast %cst_5 : f32 to vector<8x1xf32>
    %16 = arith.mulf %15, %5 : vector<8x1xf32>
    %17 = arith.addf %14, %16 : vector<8x1xf32>
    %18 = tpu.iota {dimensions = array<i32: 1>} : vector<1x32xi32>
    %19 = vector.broadcast %18 : vector<1x32xi32> to vector<8x32xi32>
    %20 = vector.broadcast %3 : vector<8x1xi32> to vector<8x32xi32>
    %21 = arith.cmpi eq, %19, %20 : vector<8x32xi32>
    %cst_6 = arith.constant 0.000000e+00 : f32
    %22 = vector.broadcast %cst_6 : f32 to vector<8x32xf32>
    %23 = arith.select %21, %2, %22 : vector<8x32xi1>, vector<8x32xf32>
    %cst_7 = arith.constant dense<0.000000e+00> : vector<8xf32>
    %24 = vector.multi_reduction <add>, %23, %cst_7 [1] : vector<8x32xf32> to vector<8xf32>
    %25 = vector.shape_cast %24 : vector<8xf32> to vector<8x1xf32>
    %26 = vector.extract_strided_slice %2 {offsets = [0, 0], sizes = [8, 1], strides = [1, 1]} : vector<8x32xf32> to vector<8x1xf32>
    %cst_8 = arith.constant 0.00333333341 : f32
    %27 = vector.broadcast %cst_8 : f32 to vector<8x1xf32>
    %28 = arith.mulf %27, %17 : vector<8x1xf32>
    %cst_9 = arith.constant 0.896666646 : f32
    %29 = vector.broadcast %cst_9 : f32 to vector<8x1xf32>
    %30 = arith.mulf %29, %25 : vector<8x1xf32>
    %31 = arith.addf %28, %30 : vector<8x1xf32>
    %cst_10 = arith.constant 0.00333333341 : f32
    %32 = vector.broadcast %cst_10 : f32 to vector<8x1xf32>
    %33 = arith.mulf %32, %26 : vector<8x1xf32>
    %34 = arith.subf %31, %33 : vector<8x1xf32>
    %35 = arith.subf %12, %34 : vector<8x1xf32>
    %c8_i32 = arith.constant 8 : i32
    %36 = arith.muli %1, %c8_i32 : i32
    %37 = tpu.iota {dimensions = array<i32: 0>} : vector<8x1xi32>
    %38 = vector.broadcast %36 : i32 to vector<8x1xi32>
    %39 = arith.addi %38, %37 : vector<8x1xi32>
    %c0_i32 = arith.constant 0 : i32
    %40 = vector.broadcast %c0_i32 : i32 to vector<8x1xi32>
    %41 = arith.cmpi ne, %3, %40 : vector<8x1xi32>
    %c8_i32_11 = arith.constant 8 : i32
    %42 = vector.broadcast %c8_i32_11 : i32 to vector<8x1xi32>
    %43 = arith.cmpi slt, %39, %42 : vector<8x1xi32>
    %44 = arith.andi %41, %43 : vector<8x1xi1>
    %cst_12 = arith.constant 0.000000e+00 : f32
    %45 = vector.broadcast %cst_12 : f32 to vector<8x1xf32>
    %46 = arith.select %44, %35, %45 : vector<8x1xi1>, vector<8x1xf32>
    %c0_i32_13 = arith.constant 0 : i32
    %47 = arith.cmpi eq, %arg1, %c0_i32_13 : i32
    %48 = arith.extui %47 : i1 to i32
    %c0_i32_14 = arith.constant 0 : i32
    %49 = arith.cmpi ne, %48, %c0_i32_14 : i32
    scf.if %49 {
      %cst_22 = arith.constant 0.000000e+00 : f32
      %58 = vector.broadcast %cst_22 : f32 to vector<1x1xf32>
      %c0_23 = arith.constant 0 : index
      %c0_24 = arith.constant 0 : index
      %59 = vector.load %arg5[%c0_23, %c0_24] : memref<1x1xf32, #tpu.memory_space<vmem>>, vector<1x1xf32>
      tpu.vector_store %arg5[%c0_23, %c0_24], %58 {strides = array<i32>} : memref<1x1xf32, #tpu.memory_space<vmem>>, vector<1x1xf32>,
    } else {
    }
    %c0_15 = arith.constant 0 : index
    %c0_16 = arith.constant 0 : index
    %50 = vector.load %arg5[%c0_15, %c0_16] : memref<1x1xf32, #tpu.memory_space<vmem>>, vector<1x1xf32>
    %cst_17 = arith.constant dense<0.000000e+00> : vector<1xf32>
    %51 = vector.multi_reduction <add>, %46, %cst_17 [0] : vector<8x1xf32> to vector<1xf32>
    %52 = vector.shape_cast %51 : vector<1xf32> to vector<1x1xf32>
    %53 = arith.addf %50, %52 : vector<1x1xf32>
    %c0_18 = arith.constant 0 : index
    %c0_19 = arith.constant 0 : index
    %54 = vector.load %arg5[%c0_18, %c0_19] : memref<1x1xf32, #tpu.memory_space<vmem>>, vector<1x1xf32>
    tpu.vector_store %arg5[%c0_18, %c0_19], %53 {strides = array<i32>} : memref<1x1xf32, #tpu.memory_space<vmem>>, vector<1x1xf32>,
    %c0_i32_20 = arith.constant 0 : i32
    %55 = arith.cmpi eq, %arg1, %c0_i32_20 : i32
    %56 = arith.extui %55 : i1 to i32
    %c0_i32_21 = arith.constant 0 : i32
    %57 = arith.cmpi ne, %56, %c0_i32_21 : i32
    scf.if %57 {
      %c0_22 = arith.constant 0 : index
      %c0_23 = arith.constant 0 : index
      %58 = vector.load %arg5[%c0_22, %c0_23] : memref<1x1xf32, #tpu.memory_space<vmem>>, vector<1x1xf32>
      %59 = vector.shape_cast %58 : vector<1x1xf32> to vector<1x1x1xf32>
      %60 = vector.broadcast %59 : vector<1x1x1xf32> to vector<1x8x128xf32>
      %c0_24 = arith.constant 0 : index
      %c0_25 = arith.constant 0 : index
      %c0_26 = arith.constant 0 : index
      %61 = vector.load %arg4[%c0_24, %c0_25, %c0_26] : memref<1x8x128xf32, #tpu.memory_space<vmem>>, vector<1x8x128xf32>
      tpu.vector_store %arg4[%c0_24, %c0_25, %c0_26], %60 {strides = array<i32>} : memref<1x8x128xf32, #tpu.memory_space<vmem>>, vector<1x8x128xf32>,
    } else {
    }
    return
  }
  func.func @transform_0(%arg0: i32, %arg1: i32) -> (i32, i32) {
    %c1_i32 = arith.constant 1 : i32
    %0 = arith.muli %arg0, %c1_i32 : i32
    %1 = arith.addi %0, %arg1 : i32
    %c0_i32 = arith.constant 0 : i32
    %2 = arith.minsi %1, %c0_i32 : i32
    %c0_i32_0 = arith.constant 0 : i32
    %c0_i32_1 = arith.constant 0 : i32
    return %2, %c0_i32_0 : i32, i32
  }
  func.func @transform_1(%arg0: i32, %arg1: i32) -> (i32, i32) {
    %c1_i32 = arith.constant 1 : i32
    %0 = arith.muli %arg0, %c1_i32 : i32
    %1 = arith.addi %0, %arg1 : i32
    %c0_i32 = arith.constant 0 : i32
    %2 = arith.minsi %1, %c0_i32 : i32
    %c0_i32_0 = arith.constant 0 : i32
    %c0_i32_1 = arith.constant 0 : i32
    return %2, %c0_i32_0 : i32, i32
  }
  func.func @transform_2(%arg0: i32, %arg1: i32) -> (i32, i32, i32) {
    %c0_i32 = arith.constant 0 : i32
    %c0_i32_0 = arith.constant 0 : i32
    %c0_i32_1 = arith.constant 0 : i32
    return %arg0, %c0_i32, %c0_i32_0 : i32, i32, i32
  }
}

</mosaic_0001>

<bundles_post_ra>
// kernel: tpu_custom_call.1
= control target key start
LH: loop header
LB: loop body
LE: loop exit
PB: predicated region body
PF: predicated region fallthrough
CT: control target
= control target key end

     0   :  { %vm69_vm0 = vcmask 261120   ;;  %s246_s0 = inlined_call_operand.vmem [shape: f32[8,32], index: 0, kind: input, shape index: {}]   ;;  %s247_s1 = inlined_call_operand.vmem [shape: s32[8,1], index: 1, kind: input, shape index: {}]   ;;  %s248_s2 = inlined_call_operand.hbm [shape: f32[1,8,128], index: 2, kind: output, shape index: {}]  }
   0x1   :  { %v67_v0 = vld [vmem:[%s246_s0] sm:$0xff] }
   0x2   :  { %7 = vsyncpa [#allocation4], 0  ;;  %v70_v1 = vsel %vm69_vm0, %v67_v0, -inf  ;;  %v204_v2 = vmov 0   ;;  %v68_v3 = vld [vmem:[%s247_s1] sm:$0xff]  ;;  %v87_v7 = vlaneseq  ;;  %vm116_vm2 = vcmask 0  }
   0x3   :  { %174 = vset.pattern.permute.xlu0 %v204_v2  ;;  %175 = vset.pattern.permute.xlu1 %v204_v2  ;;  %v205_v15 = vmov 0.0   ;;  %v100_v22 = vmul.f32 0.0033333334, %v67_v0  ;;  %vm108_vm3 = vcmp.ne.s32.totalorder %v68_v3, 0  ;;  %vm119_vm4 = vcmask 7168   ;;  %s206_s0 = smov [#allocation3]  }
   0x4   :  { %71 = vmax.xlane.f32.xlu0 %v70_v1  ;;  %v88_v8 = vand.u32 127, %v87_v7  ;;  %117 = vst.msk [vmem:[#allocation2] sm:$0x1] %vm116_vm2, %v205_v15  ;;  %s150_s1 = sshll.u32 %s206_s0, 4  ;;  %s151_s1 = int_to_ptr.vmem [resolvable:$true] %s150_s1 }
   0x5   :  { %s180_s13 = scalar_lea.vmem %s151_s1, 128  ;;  %p185_p1 = scmp.lt.s32.totalorder %s151_s1, %s151_s1 }
   0x6   :  { %p181_p0 = scmp.ne.s32.totalorder %s151_s1, %s180_s13  ;;  %p186_p2 = scmp.lt.s32.totalorder %s180_s13, %s180_s13 }
   0x8   :  { %p187_p3 = por %p186_p2, %p185_p1 }
   0xa   :  { %p188_p4 = pnand %p187_p3, %p181_p0 }
   0xb   :  { %v118_v37 = vld [vmem:[#allocation2] sm:$0x1] }
  0x1a   :  { %90 = vperm.xlu0 %174, %v68_v3  }
  0x91   :  { %v72_v4 = vpop.xlane.xlu0 %71 }
  0x92   :  { %v73_v5 = vsub.f32 %v67_v0, %v72_v4  ;;  %v85_v17 = vmul.f32 32.0, %v72_v4 }
  0x94   :  { %v74_v6 = vmul.f32 1.442695, %v73_v5  ;;  %v82_v13 = vsel %vm69_vm0, %v73_v5, 0.0 }
  0x96   :  { %176 = vpow2.f32 %v74_v6 }
  0x99   :  { %v91_v9 = vpop.permute.xlu0 %90 }
  0x9a   :  { %vm92_vm1 = vcmp.eq.s32.totalorder %v88_v8, %v91_v9 }
  0x9b   :  { %v93_v12 = vsel %vm92_vm1, %v67_v0, 0.0 }
  0x9c   :  { %v94_v14 = vsel %vm69_vm0, %v93_v12, 0.0 }
  0xa0   :  { %v177_v10 = vpop.eup %176 }
  0xa1   :  { %v76_v11 = vsel %vm69_vm0, %v177_v10, 0.0 }
  0xa2   :  { %77 = vadd.xlane.f32.xlu1 %v76_v11 }
  0xa6   :  { %83 = vadd.xlane.f32.xlu1 %v82_v13 }
  0xaa   :  { %95 = vadd.xlane.f32.xlu1 %v94_v14 }
 0x12f   :  { %v78_v16 = vpop.xlane.xlu1 %77 }
 0x130   :  { %178 = vlog2.f32 %v78_v16 }
 0x133   :  { %v84_v18 = vpop.xlane.xlu1 %83 }
 0x134   :  { %v86_v19 = vadd.f32 %v85_v17, %v84_v18 }
 0x136   :  { %v97_v21 = vmul.f32 0.0033333334, %v86_v19 }
 0x137   :  { %v96_v20 = vpop.xlane.xlu1 %95 }
 0x138   :  { %v98_v23 = vmul.f32 0.89666665, %v96_v20 }
 0x13a   :  { %v179_v24 = vpop.eup %178  ;;  %v99_v25 = vadd.f32 %v98_v23, %v97_v21 }
 0x13b   :  { %v80_v26 = vmul.f32 0.6931472, %v179_v24 }
 0x13c   :  { %v101_v27 = vsub.f32 %v99_v25, %v100_v22 }
 0x13d   :  { %v81_v28 = vadd.f32 %v80_v26, %v72_v4 }
 0x13f   :  { %v102_v29 = vsub.f32 %v81_v28, %v101_v27 }
 0x141   :  { %v111_v30 = vsel %vm108_vm3, %v102_v29, 0.0 }
 0x142   :  { %v120_v31 = vsel %vm119_vm4, %v111_v30, 0.0 }
 0x143   :  { %v121_v32 = vrot.slane %v120_v31, 4 }
 0x145   :  { %v122_v33 = vadd.f32 %v121_v32, %v120_v31 }
 0x147   :  { %v123_v34 = vrot.slane %v122_v33, 2 }
 0x149   :  { %v124_v35 = vadd.f32 %v123_v34, %v122_v33 }
 0x14b   :  { %v125_v36 = vrot.slane %v124_v35, 1 }
 0x14d   :  { %v126_v38 = vadd.f32 %v125_v36, %v124_v35 }
 0x14f   :  { %v127_v39 = vadd.f32 %v126_v38, %v118_v37 }
 0x151   :  { %129 = vst.msk [vmem:[#allocation2] sm:$0x1] %vm116_vm2, %v127_v39 }
 0x158   :  { %v170_v40 = vld [vmem:[#allocation2] ss:$0 sm:$0xff] }
 0x159   :  { %140 = vperm.xlu1 %175, %v170_v40  }
 0x1d8   :  { %v141_v41 = vpop.permute.xlu1 %140 }
 0x1d9   :  { %143 = vst [vmem:[#allocation3] sm:$0xff] %v141_v41 }
 0x1da   :  { %191 = shalt.err (!%p188_p4)
}
 0x1db   :  { %s192_s16 = scalar_lea.hbm %s248_s2, 128 }
 0x1dc   :  { %p193_p5 = scmp.ne.s32.totalorder %s248_s2, %s192_s16  ;;  %p196_p6 = scmp.lt.u32.totalorder %s192_s16, %s248_s2 }
 0x1de   :  { %p198_p7 = pnand %p196_p6, %p193_p5 }
 0x1e0   :  { %201 = shalt.err (!%p198_p7)
}
 0x1e1   :  { %153 = dma.vmem_to_hbm [thread:$0]  %s151_s1, 128, %s248_s2, [#allocation4]  }
 0x1e2   :  { %202 = dma.done.wait [#allocation4], 128  }
 0x1e3   :  { %203 = vsyncadd [#allocation4], 4294967168 }
 0x1e4   :  { %157 = vsyncpa [#allocation4], 1 }

</bundles_post_ra>
